<compile_context>
chip_gen: v5e
topology: v5e:2x2
jax: 0.10.0
libtpu: 0.0.40
codegen_flags: <defaults>
</compile_context>

<pallas_src>
import functools

import jax
import jax.numpy as jnp
from jax import lax
from jax.experimental import pallas as pl
from jax.experimental.pallas import tpu as pltpu

_LANE = 128
_TILE_BYTES = 4 * 1024 * 1024        # per x-buffer target (double-buffered -> 8 MiB)
_VMEM_LIMIT = 32 * 1024 * 1024       # explicit scoped-VMEM cap: > v5e default, <= v7x physical
_DOT_MAX_TL = 2048                   # MXU dot-with-ones only when the column stays cheap
_PALLAS_MIN_BYTES = 64 * 1024        # below this, launch/DMA overhead dwarfs the arithmetic


def _cdiv(a, b):
    return -(-a // b)


def _sublane(itemsize):
    return {4: 8, 2: 16, 1: 32}.get(itemsize, 8)


def _pick_tiles(rows, l, itemsize, tile_bytes):
    """Pick (row_tile, lane_tile) so one x block fills ~tile_bytes (review item #1/#2)."""
    sub = _sublane(itemsize)
    budget = max(tile_bytes // itemsize, sub * _LANE)      # elements per block
    if rows * l <= budget:                                 # whole problem fits one block
        return rows, l
    if sub * l <= budget:                                  # full-L row strips fit
        return min(rows, (budget // l) // sub * sub), l
    tr = rows if rows <= 8 * sub else 8 * sub              # keep rows modest, fill lanes
    tl = min(l, max(_LANE, (budget // tr) // _LANE * _LANE))
    return tr, tl


# ----------------------------- unmasked mean -----------------------------

def _mean_kernel(x_ref, *refs, true_l, tl, use_dot, precision):
    if use_dot:
        w_ref, o_ref, acc_ref = refs                       # w: (tl, 1) zero-padded ones
    else:
        o_ref, acc_ref = refs
        w_ref = None

    k = pl.program_id(1)
    nk = pl.num_programs(1)

    @pl.when(k == 0)
    def _init():
        acc_ref[...] = jnp.zeros_like(acc_ref)

    def accumulate(sanitize_tail):
        x = x_ref[...]                                     # (tm, tl), native dtype
        if sanitize_tail:                                  # zero padded lanes (garbage-safe)
            col = k * tl + lax.broadcasted_iota(jnp.int32, (1, tl), 1)
            x = jnp.where(col < true_l, x, 0)
        if use_dot:
            # MXU reduce: cast + lane-reduce move off the VPU/XLU (review items #4/#5).
            acc_ref[...] += jnp.dot(x, w_ref[...],
                                    preferred_element_type=jnp.float32,
                                    precision=precision)
        else:
            acc_ref[...] += jnp.sum(x.astype(jnp.float32), axis=-1, keepdims=True)

    if true_l % tl == 0:
        accumulate(False)
    else:
        # Tail sanitisation only on the last L-tile; steady state stays lean (item #6).
        @pl.when(k < nk - 1)
        def _steady():
            accumulate(False)

        @pl.when(k == nk - 1)
        def _tail():
            accumulate(True)

    @pl.when(k == nk - 1)
    def _finalize():
        o_ref[...] = (acc_ref[...] * (1.0 / true_l)).astype(o_ref.dtype)


def _global_avg_unmasked(x, tile_bytes):
    b, c, l = x.shape
    r = b * c
    itemsize = jnp.dtype(x.dtype).itemsize
    out_dtype = x.dtype                                    # torch .mean preserves dtype

    tm, tl = _pick_tiles(r, l, itemsize, tile_bytes)
    nl = _cdiv(l, tl)
    grid = (_cdiv(r, tm), nl)
    use_dot = tl <= _DOT_MAX_TL                            # column footprint ~ tl*128*itemsize
    # HIGHEST keeps the f32 MXU reduce at full f32 accuracy; bf16 inputs are exact anyway.
    precision = lax.Precision.HIGHEST if x.dtype == jnp.float32 else None

    x2 = x.reshape(r, l)                                   # free reshape, lane-dense rows
    in_specs = [pl.BlockSpec((tm, tl), lambda i, k: (i, k))]
    args = [x2]
    if use_dot:
        l_pad = nl * tl
        # ones column, zero in the padded tail -> tail columns can never pollute the sum
        w = (jnp.arange(l_pad, dtype=jnp.int32) < l).astype(x.dtype).reshape(l_pad, 1)
        in_specs.append(pl.BlockSpec((tl, 1), lambda i, k: (k, 0)))
        args.append(w)
    # NOTE: on v7x it is worth sweeping pipeline_mode=pl.Buffered(3) on the x spec.

    kernel = functools.partial(_mean_kernel, true_l=l, tl=tl,
                               use_dot=use_dot, precision=precision)
    out = pl.pallas_call(
        kernel,
        out_shape=jax.ShapeDtypeStruct((r, 1), out_dtype),
        grid_spec=pltpu.PrefetchScalarGridSpec(
            num_scalar_prefetch=0,
            grid=grid,
            in_specs=in_specs,
            out_specs=pl.BlockSpec((tm, 1), lambda i, k: (i, 0)),
            scratch_shapes=[pltpu.VMEM((tm, 1), jnp.float32)],
        ),
        compiler_params=pltpu.CompilerParams(
            dimension_semantics=("parallel", "arbitrary"),
            vmem_limit_bytes=_VMEM_LIMIT),
        cost_estimate=pl.CostEstimate(
            flops=2 * r * l,
            transcendentals=0,
            bytes_accessed=r * l * itemsize + r * jnp.dtype(out_dtype).itemsize),
    )(*args)
    return out.reshape(b, c)


# ------------------------------ masked mean -------------------------------

def _masked_mean_kernel(x_ref, m_ref, o_ref, num_ref, den_ref, *, true_l, tl):
    # x_ref: (1, TC, TL); m_ref: (1, 1, TL) f32 (zero-padded tail); o_ref: (1, TC, 1)
    k = pl.program_id(2)
    nk = pl.num_programs(2)

    @pl.when(k == 0)
    def _init():
        num_ref[...] = jnp.zeros_like(num_ref)
        den_ref[...] = jnp.zeros_like(den_ref)

    m = m_ref[...]                                         # (1, 1, tl) f32
    den_ref[...] += jnp.sum(m, axis=-1, keepdims=True)     # exact: padded lanes are 0

    def accumulate(sanitize_tail):
        x = x_ref[...].astype(jnp.float32)                 # (1, tc, tl)
        if sanitize_tail:                                  # garbage-safe on padded lanes
            col = k * tl + lax.broadcasted_iota(jnp.int32, (1, 1, tl), 2)
            x = jnp.where(col < true_l, x, 0.0)
        num_ref[...] += jnp.sum(x * m, axis=-1, keepdims=True)

    if true_l % tl == 0:
        accumulate(False)
    else:
        @pl.when(k < nk - 1)
        def _steady():
            accumulate(False)

        @pl.when(k == nk - 1)
        def _tail():
            accumulate(True)

    @pl.when(k == nk - 1)
    def _finalize():
        # all-zero mask -> den = 0 -> inf/nan, matching the PyTorch reference
        o_ref[...] = (num_ref[...] / den_ref[...]).astype(o_ref.dtype)


def _global_avg_masked(x, mask, tile_bytes):
    b, c, l = x.shape
    itemsize = jnp.dtype(x.dtype).itemsize
    out_dtype = jnp.promote_types(x.dtype, jnp.float32)    # torch: x * mask.float() promotes

    tc, tl = _pick_tiles(c, l, itemsize, tile_bytes)       # C is tiled too (review #7/#8)
    nc, nl = _cdiv(c, tc), _cdiv(l, tl)
    l_pad = nl * tl

    m = mask.astype(jnp.float32)                           # mask.float(); tiny (B, L) array
    if l_pad != l:
        m = jnp.pad(m, ((0, 0), (0, l_pad - l)))           # explicit zeros -> exact denominator
    m3 = m.reshape(b, 1, l_pad)

    kernel = functools.partial(_masked_mean_kernel, true_l=l, tl=tl)
    out = pl.pallas_call(
        kernel,
        out_shape=jax.ShapeDtypeStruct((b, c, 1), out_dtype),
        grid_spec=pltpu.PrefetchScalarGridSpec(
            num_scalar_prefetch=0,
            grid=(b, nc, nl),                              # B and C-tiles both "parallel"
            in_specs=[pl.BlockSpec((1, tc, tl), lambda i, j, k: (i, j, k)),
                      pl.BlockSpec((1, 1, tl), lambda i, j, k: (i, 0, k))],
            out_specs=pl.BlockSpec((1, tc, 1), lambda i, j, k: (i, j, 0)),
            scratch_shapes=[pltpu.VMEM((1, tc, 1), jnp.float32),
                            pltpu.VMEM((1, 1, 1), jnp.float32)],
        ),
        compiler_params=pltpu.CompilerParams(
            dimension_semantics=("parallel", "parallel", "arbitrary"),
            vmem_limit_bytes=_VMEM_LIMIT),
        cost_estimate=pl.CostEstimate(
            flops=2 * b * c * l,
            transcendentals=0,
            bytes_accessed=(b * c * l * itemsize + b * l_pad * 4
                            + b * c * jnp.dtype(out_dtype).itemsize)),
    )(x, m3)
    return out.reshape(b, c)


# -------------------------------- dispatch --------------------------------

def global_avg_1d(x, mask=None, *, force_pallas=False, tile_bytes=_TILE_BYTES):
    """GlobalAvg1D.forward.  x: (B, C, L); mask: (B, L) or None."""
    if not force_pallas and x.size * jnp.dtype(x.dtype).itemsize < _PALLAS_MIN_BYTES:
        # Tiny inputs: custom-call + DMA overhead dwarfs the arithmetic; let XLA fuse it.
        if mask is None:
            return jnp.mean(x, axis=-1)
        m = mask.astype(jnp.float32)[:, None, :]
        return jnp.sum(x * m, axis=-1) / jnp.sum(m, axis=-1)
    if mask is None:
        return _global_avg_unmasked(x, tile_bytes)
    return _global_avg_masked(x, mask, tile_bytes)


if __name__ == "__main__":
    key = jax.random.PRNGKey(0)
    k1, k2, k3, k4, k5, k6, k7, k8 = jax.random.split(key, 8)

    # --- small shapes matching the module's usual call pattern (force the Pallas path) ---
    B, C, L = 2, 4, 16
    x = jax.random.normal(k1, (B, C, L), dtype=jnp.float32)
    mask = (jax.random.uniform(k2, (B, L)) > 0.3).astype(jnp.int32)

    out_u = jax.block_until_ready(global_avg_1d(x, None, force_pallas=True))
    ref_u = jnp.mean(x, axis=-1)
    assert out_u.shape == (B, C) and out_u.dtype == x.dtype
    assert jnp.allclose(out_u, ref_u, atol=1e-5, rtol=1e-5)

    out_m = jax.block_until_ready(global_avg_1d(x, mask, force_pallas=True))
    mf = mask.astype(jnp.float32)[:, None, :]
    ref_m = jnp.sum(x * mf, axis=-1) / jnp.sum(mf, axis=-1)
    assert out_m.shape == (B, C) and out_m.dtype == jnp.float32
    assert jnp.allclose(out_m, ref_m, atol=1e-5, rtol=1e-5)

    # --- tiny-input dispatch path (plain jnp fallback) ---
    out_d = jax.block_until_ready(global_avg_1d(x, mask))
    assert jnp.allclose(out_d, ref_m, atol=1e-5, rtol=1e-5)

    # --- bf16, non-128-multiple L, small tile budget: multi-L-tile pipeline, MXU
    #     dot-with-ones reduce, last-tile-only tail sanitisation, native-dtype traffic ---
    B2, C2, L2 = 2, 8, 2300
    xb = jax.random.normal(k3, (B2, C2, L2), dtype=jnp.bfloat16)
    mask2 = jax.random.uniform(k4, (B2, L2)) > 0.5

    out2_u = jax.block_until_ready(
        global_avg_1d(xb, None, force_pallas=True, tile_bytes=16 * 1024))
    ref2_u = jnp.mean(xb.astype(jnp.float32), axis=-1)
    assert out2_u.shape == (B2, C2) and out2_u.dtype == xb.dtype
    assert jnp.allclose(out2_u.astype(jnp.float32), ref2_u, atol=2e-2, rtol=2e-2)

    out2_m = jax.block_until_ready(
        global_avg_1d(xb, mask2, force_pallas=True, tile_bytes=16 * 1024))
    mf2 = mask2.astype(jnp.float32)[:, None, :]
    ref2_m = jnp.sum(xb.astype(jnp.float32) * mf2, axis=-1) / jnp.sum(mf2, axis=-1)
    assert out2_m.shape == (B2, C2) and out2_m.dtype == jnp.float32
    assert jnp.allclose(out2_m, ref2_m, atol=1e-3, rtol=1e-3)

    # --- f32 multi-L-tile MXU path (checks Precision.HIGHEST accuracy + tail step) ---
    B3, C3, L3 = 1, 4, 2300
    xf = jax.random.normal(k5, (B3, C3, L3), dtype=jnp.float32)
    out3 = jax.block_until_ready(
        global_avg_1d(xf, None, force_pallas=True, tile_bytes=16 * 1024))
    assert jnp.allclose(out3, jnp.mean(xf, axis=-1), atol=1e-4, rtol=1e-4)

    # --- long-L / few-rows shape at the default budget: exercises the VPU accumulate
    #     path (lane tile > 2048) that the budget-driven tiling now produces ---
    B4, C4, L4 = 2, 4, 9000
    xl = jax.random.normal(k6, (B4, C4, L4), dtype=jnp.float32)
    out4 = jax.block_until_ready(global_avg_1d(xl, None, force_pallas=True))
    assert jnp.allclose(out4, jnp.mean(xl, axis=-1), atol=1e-4, rtol=1e-4)

    # --- masked path with C tiling (nc > 1), non-divisible C and L tails ---
    B5, C5, L5 = 1, 96, 700
    xc = jax.random.normal(k7, (B5, C5, L5), dtype=jnp.float32)
    maskc = (jax.random.uniform(k8, (B5, L5)) > 0.4).astype(jnp.float32)
    out5 = jax.block_until_ready(
        global_avg_1d(xc, maskc, force_pallas=True, tile_bytes=16 * 1024))
    mfc = maskc[:, None, :]
    ref5 = jnp.sum(xc * mfc, axis=-1) / jnp.sum(mfc, axis=-1)
    assert out5.shape == (B5, C5)
    assert jnp.allclose(out5, ref5, atol=1e-4, rtol=1e-4)

    print("KERNEL_OK")
</pallas_src>

<mosaic_0001>
module attributes {stable_mosaic.version = 11 : i64} {
  func.func @_mean_kernel(%arg0: i32, %arg1: i32, %arg2: memref<8x16xf32, #tpu.memory_space<vmem>>, %arg3: memref<16x1xf32, #tpu.memory_space<vmem>>, %arg4: memref<8x1xf32, #tpu.memory_space<vmem>>, %arg5: memref<8x1xf32, #tpu.memory_space<vmem>>) attributes {dimension_semantics = [#tpu.dimension_semantics<parallel>, #tpu.dimension_semantics<arbitrary>], iteration_bounds = array<i64: 1, 1>, scalar_prefetch = 0 : i64, scratch_operands = 1 : i64, tpu.core_type = #tpu.core_type<tc>, window_params = [{transform_indices = @transform_0, window_bounds = array<i64: 8, 16>}, {transform_indices = @transform_1, window_bounds = array<i64: 16, 1>}, {transform_indices = @transform_2, window_bounds = array<i64: 8, 1>}]} {
    %c0_i32 = arith.constant 0 : i32
    %0 = arith.cmpi eq, %arg1, %c0_i32 : i32
    %1 = arith.extui %0 : i1 to i32
    %c0_i32_0 = arith.constant 0 : i32
    %2 = arith.cmpi ne, %1, %c0_i32_0 : i32
    scf.if %2 {
      %cst_10 = arith.constant 0.000000e+00 : f32
      %12 = vector.broadcast %cst_10 : f32 to vector<8x1xf32>
      %c0_11 = arith.constant 0 : index
      %c0_12 = arith.constant 0 : index
      %13 = vector.load %arg5[%c0_11, %c0_12] : memref<8x1xf32, #tpu.memory_space<vmem>>, vector<8x1xf32>
      tpu.vector_store %arg5[%c0_11, %c0_12], %12 {strides = array<i32>} : memref<8x1xf32, #tpu.memory_space<vmem>>, vector<8x1xf32>,
    } else {
    }
    %c0 = arith.constant 0 : index
    %c0_1 = arith.constant 0 : index
    %3 = vector.load %arg2[%c0, %c0_1] : memref<8x16xf32, #tpu.memory_space<vmem>>, vector<8x16xf32>
    %c0_2 = arith.constant 0 : index
    %c0_3 = arith.constant 0 : index
    %4 = vector.load %arg5[%c0_2, %c0_3] : memref<8x1xf32, #tpu.memory_space<vmem>>, vector<8x1xf32>
    %c0_4 = arith.constant 0 : index
    %c0_5 = arith.constant 0 : index
    %5 = vector.load %arg3[%c0_4, %c0_5] : memref<16x1xf32, #tpu.memory_space<vmem>>, vector<16x1xf32>
    %cst = arith.constant dense<0.000000e+00> : vector<8x1xf32>
    %6 = tpu.matmul %3, %5, %cst {dimension_numbers = #tpu.dot_dimension_numbers<[1], [0], [0], [1], [0, 0, 1, 1], [], []>, precision = #tpu.contract_precision<fp32>} : vector<8x16xf32>, vector<16x1xf32>, vector<8x1xf32> -> vector<8x1xf32>
    %7 = arith.addf %4, %6 : vector<8x1xf32>
    %c0_6 = arith.constant 0 : index
    %c0_7 = arith.constant 0 : index
    %8 = vector.load %arg5[%c0_6, %c0_7] : memref<8x1xf32, #tpu.memory_space<vmem>>, vector<8x1xf32>
    tpu.vector_store %arg5[%c0_6, %c0_7], %7 {strides = array<i32>} : memref<8x1xf32, #tpu.memory_space<vmem>>, vector<8x1xf32>,
    %c0_i32_8 = arith.constant 0 : i32
    %9 = arith.cmpi eq, %arg1, %c0_i32_8 : i32
    %10 = arith.extui %9 : i1 to i32
    %c0_i32_9 = arith.constant 0 : i32
    %11 = arith.cmpi ne, %10, %c0_i32_9 : i32
    scf.if %11 {
      %c0_10 = arith.constant 0 : index
      %c0_11 = arith.constant 0 : index
      %12 = vector.load %arg5[%c0_10, %c0_11] : memref<8x1xf32, #tpu.memory_space<vmem>>, vector<8x1xf32>
      %cst_12 = arith.constant 6.250000e-02 : f32
      %13 = vector.broadcast %cst_12 : f32 to vector<8x1xf32>
      %14 = arith.mulf %12, %13 : vector<8x1xf32>
      %c0_13 = arith.constant 0 : index
      %c0_14 = arith.constant 0 : index
      %15 = vector.load %arg4[%c0_13, %c0_14] : memref<8x1xf32, #tpu.memory_space<vmem>>, vector<8x1xf32>
      tpu.vector_store %arg4[%c0_13, %c0_14], %14 {strides = array<i32>} : memref<8x1xf32, #tpu.memory_space<vmem>>, vector<8x1xf32>,
    } else {
    }
    return
  }
  func.func @transform_0(%arg0: i32, %arg1: i32) -> (i32, i32) {
    %c0_i32 = arith.constant 0 : i32
    return %arg0, %arg1 : i32, i32
  }
  func.func @transform_1(%arg0: i32, %arg1: i32) -> (i32, i32) {
    %c0_i32 = arith.constant 0 : i32
    %c0_i32_0 = arith.constant 0 : i32
    return %arg1, %c0_i32 : i32, i32
  }
  func.func @transform_2(%arg0: i32, %arg1: i32) -> (i32, i32) {
    %c0_i32 = arith.constant 0 : i32
    %c0_i32_0 = arith.constant 0 : i32
    return %arg0, %c0_i32 : i32, i32
  }
}

</mosaic_0001>

<bundles_post_ra>
// kernel: tpu_custom_call.1
= control target key start
LH: loop header
LB: loop body
LE: loop exit
PB: predicated region body
PF: predicated region fallthrough
CT: control target
= control target key end

     0   :  { %vm21_vm0 = vcmask 130048   ;;  %vm15_vm1 = vcmask 7168   ;;  %v198_v19 = vmov 0.0   ;;  %s229_s1 = inlined_call_operand.vmem [shape: f32[16,1], index: 1, kind: input, shape index: {}]   ;;  %s230_s0 = inlined_call_operand.vmem [shape: f32[8,16], index: 0, kind: input, shape index: {}]   ;;  %s231_s2 = inlined_call_operand.vmem [shape: f32[8,1], index: 2, kind: output, shape index: {}]  }
   0x1   :  { %v20_v0 = vld [vmem:[%s229_s1 + $0x8] sm:$0xff]  ;;  %v19_v1 = vld [vmem:[%s229_s1] sm:$0xff]  ;;  %16 = vst.msk [vmem:[#allocation2] sm:$0xff] %vm15_vm1, %v198_v19 }
   0x2   :  { %v17_v2 = vld [vmem:[%s230_s0] sm:$0xff]  ;;  %v39_v3 = vand.u32 4294901760, %v20_v0  ;;  %v41_v4 = vand.u32 4294901760, %v19_v1 }
   0x3   :  { %v23_v5 = vsel %vm21_vm0, %v17_v2, 0 }
   0x4   :  { %v43_v6 = vand.u32 4294901760, %v23_v5  ;;  %v67_v7 = vsub.f32 %v20_v0, %v39_v3  ;;  %40 = vmatpush.msra.mxu0 %v39_v3  ;;  %v73_v8 = vsub.f32 %v19_v1, %v41_v4  ;;  %124 = vmatpush.msra.mxu3 %v39_v3 }
   0x6   :  { %v44_v9 = vsub.f32 %v23_v5, %v43_v6  ;;  %99 = vmatpush.msra.mxu2 %v67_v7  ;;  %42 = vmatpush.msra.mxu0 %v41_v4  ;;  %v68_v10 = vand.u32 4294901760, %v67_v7  ;;  %v74_v11 = vand.u32 4294901760, %v73_v8 }
   0x7   :  { %126 = vmatpush.msra.mxu3 %v41_v4 }
   0x8   :  { %v45_v12 = vand.u32 4294901760, %v44_v9  ;;  %102 = vmatpush.msra.mxu2 %v73_v8  ;;  %v69_v13 = vsub.f32 %v67_v7, %v68_v10  ;;  %151 = vmatpush.msrb.mxu0 %v68_v10  ;;  %v75_v14 = vsub.f32 %v73_v8, %v74_v11  ;;  %v18_v29 = vld [vmem:[#allocation2] sm:$0xff] }
   0x9   :  { %105 = vmatmul.f32.vlgmr.msra.gmra.mxu2 %v44_v9 }
   0xa   :  { %v46_v15 = vsub.f32 %v44_v9, %v45_v12  ;;  %130 = vmatmul.f32.vlgmr.msra.gmra.mxu3 %v45_v12  ;;  %v70_v16 = vand.u32 4294901760, %v69_v13  ;;  %v76_v17 = vand.u32 4294901760, %v75_v14  ;;  %155 = vmatpush.msrb.mxu0 %v74_v11 }
   0xc   :  { %v47_v18 = vand.u32 4294901760, %v46_v15  ;;  %71 = vmatpush.msra.mxu1 %v70_v16 }
   0xe   :  { %48 = vmatmul.f32.vlgmr.msra.gmra.mxu0 %v47_v18  ;;  %77 = vmatpush.msra.mxu1 %v76_v17 }
   0xf   :  { %79 = vmatmul.f32.vlgmr.msra.gmra.mxu1 %v43_v6 }
  0x10   :  { %176 = vmatpush.msrb.mxu1 %v39_v3 }
  0x12   :  { %178 = vmatpush.msrb.mxu1 %v41_v4 }
  0x16   :  { %157 = vmatmul.f32.vlgmr.msrb.gmra.mxu0 %v43_v6 }
  0x17   :  { %180 = vmatmul.f32.vlgmr.msrb.gmra.mxu1 %v43_v6 }
  0x8b   :  { %v49_v20 = vpop.f32.mrf.mxu0 }
  0x8c   :  { %v80_v21 = vpop.f32.mrf.mxu1  ;;  %v106_v22 = vpop.f32.mrf.mxu2 }
  0x8d   :  { %v81_v23 = vadd.f32 %v80_v21, %v49_v20  ;;  %v131_v24 = vpop.f32.mrf.mxu3 }
  0x8f   :  { %v107_v25 = vadd.f32 %v106_v22, %v81_v23 }
  0x91   :  { %v132_v26 = vadd.f32 %v131_v24, %v107_v25 }
  0x93   :  { %v158_v27 = vpop.f32.mrf.mxu0 }
  0x94   :  { %v159_v28 = vadd.f32 %v158_v27, %v132_v26  ;;  %v181_v30 = vpop.f32.mrf.mxu1 }
  0x96   :  { %v182_v31 = vadd.f32 %v181_v30, %v159_v28 }
  0x98   :  { %v184_v32 = vadd.f32 %v182_v31, %v18_v29 }
  0x9a   :  { %186 = vst.msk [vmem:[#allocation2] sm:$0xff] %vm15_vm1, %v184_v32 }
  0xa1   :  { %v190_v33 = vld [vmem:[#allocation2] sm:$0xff] }
  0xa2   :  { %v191_v34 = vmul.f32 0.0625, %v190_v33 }
  0xa4   :  { %192 = vst.msk [vmem:[%s231_s2] sm:$0xff] %vm15_vm1, %v191_v34 }

</bundles_post_ra>
